<compile_context>
chip_gen: v5e
topology: v5e:2x2
jax: 0.10.0
libtpu: 0.0.40
codegen_flags: <defaults>
</compile_context>

<pallas_src>
import functools

import jax
import jax.numpy as jnp
import numpy as np
from jax.experimental import pallas as pl
from jax.experimental.pallas import tpu as pltpu

BN_EPS = 1e-5
LANE = 128          # lane width -> Cout padding
MAX_TM = 512        # max rows per M tile
MXU_DTYPE = jnp.bfloat16


# ------------------------------- helpers ----------------------------------- #
def _round_up(x, m):
    return (x + m - 1) // m * m


def _compiler_params(block_bytes):
    """Double-buffered tile footprint + margin, capped below v7x VMEM."""
    vmem = int(min(max(2 * block_bytes + (4 << 20), 8 << 20), 48 << 20))
    return pltpu.CompilerParams(dimension_semantics=("parallel",),
                                vmem_limit_bytes=vmem)


# ----------------------------- Pallas kernels ------------------------------ #
def _conv_stats_kernel(*refs, with_sc: bool):
    """MXU matmul (bf16 in, f32 acc) -> raw conv tile + per-channel sum/sumsq.

    Optionally also accumulates the 1x1-projection-shortcut statistics so the
    shortcut branch never needs its own stats pass.
    """
    if with_sc:
        p_ref, w_ref, scp_ref, scw_ref, y_ref, st_ref, sc_st_ref = refs
    else:
        p_ref, w_ref, y_ref, st_ref = refs

    acc = jnp.dot(p_ref[...], w_ref[...], preferred_element_type=jnp.float32)
    y_ref[...] = acc
    st_ref[0] = jnp.concatenate(
        [jnp.sum(acc, axis=0, keepdims=True),
         jnp.sum(acc * acc, axis=0, keepdims=True)], axis=0)

    if with_sc:
        sc = jnp.dot(scp_ref[...], scw_ref[...],
                     preferred_element_type=jnp.float32)
        sc_st_ref[0] = jnp.concatenate(
            [jnp.sum(sc, axis=0, keepdims=True),
             jnp.sum(sc * sc, axis=0, keepdims=True)], axis=0)


def _bn_finalize_kernel(*refs, relu: bool, res_mode: str):
    """One-FMA BN epilogue: out = (relu)(y*scale + bias [+ residual]).

    res_mode: "none" | "identity" (pre-computed residual tile)
              | "project" (recompute tiny 1x1 shortcut matmul + its BN here).
    """
    if res_mode == "project":
        y_ref, sb_ref, scp_ref, scw_ref, sc_sb_ref, out_ref = refs
    elif res_mode == "identity":
        y_ref, sb_ref, res_ref, out_ref = refs
    else:
        y_ref, sb_ref, out_ref = refs

    out = y_ref[...] * sb_ref[0:1, :] + sb_ref[1:2, :]

    if res_mode == "project":
        sc = jnp.dot(scp_ref[...], scw_ref[...],
                     preferred_element_type=jnp.float32)
        out = out + (sc * sc_sb_ref[0:1, :] + sc_sb_ref[1:2, :])
    elif res_mode == "identity":
        out = out + res_ref[...]

    if relu:
        out = jnp.maximum(out, 0.0)
    out_ref[...] = out.astype(out_ref.dtype)


# --------------------------- pallas_call wrappers --------------------------- #
def _conv_stats(patches, w_mat, sc_patches=None, sc_w=None, *, tm):
    Mp, K = patches.shape
    Cp = w_mat.shape[1]
    n_tiles = Mp // tm
    with_sc = sc_patches is not None
    itemsz = patches.dtype.itemsize

    in_arrays = [patches, w_mat]
    in_specs = [
        pl.BlockSpec((tm, K), lambda i: (i, 0)),
        pl.BlockSpec((K, Cp), lambda i: (0, 0)),
    ]
    out_shapes = [
        jax.ShapeDtypeStruct((Mp, Cp), jnp.float32),
        jax.ShapeDtypeStruct((n_tiles, 2, Cp), jnp.float32),
    ]
    out_specs = [
        pl.BlockSpec((tm, Cp), lambda i: (i, 0)),
        pl.BlockSpec((1, 2, Cp), lambda i: (i, 0, 0)),
    ]
    block_bytes = (tm * K + K * Cp) * itemsz + (tm * Cp + 2 * Cp) * 4
    flops = 2 * Mp * K * Cp

    if with_sc:
        Ksc = sc_patches.shape[1]
        in_arrays += [sc_patches, sc_w]
        in_specs += [
            pl.BlockSpec((tm, Ksc), lambda i: (i, 0)),
            pl.BlockSpec((Ksc, Cp), lambda i: (0, 0)),
        ]
        out_shapes.append(jax.ShapeDtypeStruct((n_tiles, 2, Cp), jnp.float32))
        out_specs.append(pl.BlockSpec((1, 2, Cp), lambda i: (i, 0, 0)))
        block_bytes += (tm * Ksc + Ksc * Cp) * itemsz + 2 * Cp * 4
        flops += 2 * Mp * Ksc * Cp

    bytes_accessed = sum(int(a.size) * a.dtype.itemsize for a in in_arrays)
    bytes_accessed += sum(int(np.prod(o.shape)) * 4 for o in out_shapes)

    return pl.pallas_call(
        functools.partial(_conv_stats_kernel, with_sc=with_sc),
        grid=(n_tiles,),
        in_specs=in_specs,
        out_specs=tuple(out_specs),
        out_shape=tuple(out_shapes),
        compiler_params=_compiler_params(block_bytes),
        cost_estimate=pl.CostEstimate(flops=int(flops), transcendentals=0,
                                      bytes_accessed=int(bytes_accessed)),
    )(*in_arrays)


def _bn_finalize(y, sb, *, tm, relu, res_mode="none", res=None,
                 sc_patches=None, sc_w=None, sc_sb=None):
    Mp, Cp = y.shape
    n_tiles = Mp // tm

    in_arrays = [y, sb]
    in_specs = [
        pl.BlockSpec((tm, Cp), lambda i: (i, 0)),
        pl.BlockSpec((2, Cp), lambda i: (0, 0)),
    ]
    block_bytes = (tm * Cp + 2 * Cp) * 4
    flops = 3 * Mp * Cp

    if res_mode == "project":
        Ksc = sc_patches.shape[1]
        in_arrays += [sc_patches, sc_w, sc_sb]
        in_specs += [
            pl.BlockSpec((tm, Ksc), lambda i: (i, 0)),
            pl.BlockSpec((Ksc, Cp), lambda i: (0, 0)),
            pl.BlockSpec((2, Cp), lambda i: (0, 0)),
        ]
        block_bytes += (tm * Ksc + Ksc * Cp) * sc_patches.dtype.itemsize + 2 * Cp * 4
        flops += 2 * Mp * Ksc * Cp + 3 * Mp * Cp
    elif res_mode == "identity":
        in_arrays.append(res)
        in_specs.append(pl.BlockSpec((tm, Cp), lambda i: (i, 0)))
        block_bytes += tm * Cp * 4
        flops += Mp * Cp

    block_bytes += tm * Cp * 4  # output tile
    bytes_accessed = sum(int(a.size) * a.dtype.itemsize for a in in_arrays)
    bytes_accessed += Mp * Cp * 4

    return pl.pallas_call(
        functools.partial(_bn_finalize_kernel, relu=relu, res_mode=res_mode),
        grid=(n_tiles,),
        in_specs=in_specs,
        out_specs=pl.BlockSpec((tm, Cp), lambda i: (i, 0)),
        out_shape=jax.ShapeDtypeStruct((Mp, Cp), jnp.float32),
        compiler_params=_compiler_params(block_bytes),
        cost_estimate=pl.CostEstimate(flops=int(flops), transcendentals=0,
                                      bytes_accessed=int(bytes_accessed)),
    )(*in_arrays)


# ------------------------------- JAX glue --------------------------------- #
def _im2col(x_nhwc, ksize, stride, pad, k_pad, m_pad):
    """(N,H,W,C) -> (m_pad, k_pad) bf16 patches, row order (n,ho,wo), K order (kh,kw,C)."""
    N, H, W, C = x_nhwc.shape
    xp = jnp.pad(x_nhwc, ((0, 0), (pad, pad), (pad, pad), (0, 0)))
    Ho = (H + 2 * pad - ksize) // stride + 1
    Wo = (W + 2 * pad - ksize) // stride + 1
    cols = []
    for i in range(ksize):
        for j in range(ksize):
            cols.append(xp[:, i:i + stride * Ho:stride, j:j + stride * Wo:stride, :])
    patches = jnp.stack(cols, axis=3).reshape(N * Ho * Wo, ksize * ksize * C)
    patches = jnp.pad(patches, ((0, m_pad - N * Ho * Wo),
                                (0, k_pad - ksize * ksize * C)))
    return patches.astype(MXU_DTYPE)


def _w_to_mat(w_oihw, k_pad, c_pad):
    """PyTorch (Cout,Cin,kh,kw) -> zero-padded (k_pad, c_pad) bf16 matrix."""
    Cout, Cin, kh, kw = w_oihw.shape
    m = jnp.transpose(w_oihw, (2, 3, 1, 0)).reshape(kh * kw * Cin, Cout)
    m = jnp.pad(m, ((0, k_pad - kh * kw * Cin), (0, c_pad - Cout)))
    return m.astype(MXU_DTYPE)


def _fold_bn(stats, gamma, beta, m_real, c_pad):
    """Reduce per-tile (sum, sumsq) and fold BN into one per-channel scale/bias."""
    tot = jnp.sum(stats, axis=0)                       # (2, Cp)
    mean = tot[0] / m_real
    var = jnp.maximum(tot[1] / m_real - mean * mean, 0.0)
    g = jnp.pad(gamma.astype(jnp.float32), (0, c_pad - gamma.shape[0]))
    b = jnp.pad(beta.astype(jnp.float32), (0, c_pad - beta.shape[0]))
    scale = g * jax.lax.rsqrt(var + BN_EPS)
    bias = b - mean * scale
    return jnp.stack([scale, bias], axis=0)            # (2, Cp) f32


def basic_block_forward(x_nchw, params, stride):
    """Equivalent of BasicBlock.forward (enable_cbs=False, training-mode BN)."""
    x = jnp.transpose(x_nchw, (0, 2, 3, 1)).astype(jnp.float32)   # NHWC
    N, H, W, Cin = x.shape
    planes = params["conv1_w"].shape[0]
    Cp = _round_up(planes, LANE)
    project = (stride != 1) or (Cin != planes)

    Ho = (H + 2 - 3) // stride + 1
    Wo = (W + 2 - 3) // stride + 1
    M = N * Ho * Wo
    tm = min(MAX_TM, _round_up(M, 16))
    Mp = _round_up(M, tm)

    # --- conv1 matmul + stats (shortcut stats fused in) ---
    K1p = _round_up(9 * Cin, 16)
    p1 = _im2col(x, 3, stride, 1, K1p, Mp)
    w1 = _w_to_mat(params["conv1_w"], K1p, Cp)

    if project:
        Kscp = _round_up(Cin, 16)
        psc = _im2col(x, 1, stride, 0, Kscp, Mp)
        wsc = _w_to_mat(params["sc_w"], Kscp, Cp)
        y1, st1, st_sc = _conv_stats(p1, w1, psc, wsc, tm=tm)
        sc_sb = _fold_bn(st_sc, params["sc_bn_g"], params["sc_bn_b"], M, Cp)
    else:
        psc = wsc = sc_sb = None
        y1, st1 = _conv_stats(p1, w1, tm=tm)

    # --- bn1 + relu (one-FMA finalize) ---
    sb1 = _fold_bn(st1, params["bn1_g"], params["bn1_b"], M, Cp)
    out1 = _bn_finalize(y1, sb1, tm=tm, relu=True, res_mode="none")

    # --- conv2 matmul + stats ---
    out1_nhwc = out1[:M, :planes].reshape(N, Ho, Wo, planes)
    K2p = _round_up(9 * planes, 16)
    p2 = _im2col(out1_nhwc, 3, 1, 1, K2p, Mp)
    w2 = _w_to_mat(params["conv2_w"], K2p, Cp)
    y2, st2 = _conv_stats(p2, w2, tm=tm)
    sb2 = _fold_bn(st2, params["bn2_g"], params["bn2_b"], M, Cp)

    # --- bn2 + shortcut + relu (fused finalize) ---
    if project:
        out2 = _bn_finalize(y2, sb2, tm=tm, relu=True, res_mode="project",
                            sc_patches=psc, sc_w=wsc, sc_sb=sc_sb)
    else:
        res = jnp.pad(x.reshape(M, Cin), ((0, Mp - M), (0, Cp - Cin)))
        out2 = _bn_finalize(y2, sb2, tm=tm, relu=True, res_mode="identity",
                            res=res)

    out_nhwc = out2[:M, :planes].reshape(N, Ho, Wo, planes)
    return jnp.transpose(out_nhwc, (0, 3, 1, 2))       # back to NCHW


# --------------------------- pure-JAX reference ---------------------------- #
def _ref_forward(x, params, stride, round_mxu_inputs=False):
    rb = ((lambda a: a.astype(jnp.bfloat16).astype(jnp.float32))
          if round_mxu_inputs else (lambda a: a))

    def conv(y, w, s, pad):
        return jax.lax.conv_general_dilated(
            rb(y), rb(w), (s, s), [(pad, pad), (pad, pad)],
            dimension_numbers=("NCHW", "OIHW", "NCHW"))

    def bn(y, g, b):
        mean = jnp.mean(y, axis=(0, 2, 3), keepdims=True)
        var = jnp.mean(jnp.square(y - mean), axis=(0, 2, 3), keepdims=True)
        return ((y - mean) * jax.lax.rsqrt(var + BN_EPS)
                * g.reshape(1, -1, 1, 1) + b.reshape(1, -1, 1, 1))

    out = jax.nn.relu(bn(conv(x, params["conv1_w"], stride, 1),
                         params["bn1_g"], params["bn1_b"]))
    out = bn(conv(out, params["conv2_w"], 1, 1),
             params["bn2_g"], params["bn2_b"])
    if stride != 1 or x.shape[1] != params["conv1_w"].shape[0]:
        sc = bn(conv(x, params["sc_w"], stride, 0),
                params["sc_bn_g"], params["sc_bn_b"])
    else:
        sc = x
    return jax.nn.relu(out + sc)


# --------------------------------- main ------------------------------------ #
if __name__ == "__main__":
    key = jax.random.PRNGKey(0)

    def make_params(cin, planes, project, k):
        ks = jax.random.split(k, 9)
        p = {
            "conv1_w": 0.1 * jax.random.normal(ks[0], (planes, cin, 3, 3), jnp.float32),
            "bn1_g": 1.0 + 0.1 * jax.random.normal(ks[1], (planes,), jnp.float32),
            "bn1_b": 0.1 * jax.random.normal(ks[2], (planes,), jnp.float32),
            "conv2_w": 0.1 * jax.random.normal(ks[3], (planes, planes, 3, 3), jnp.float32),
            "bn2_g": 1.0 + 0.1 * jax.random.normal(ks[4], (planes,), jnp.float32),
            "bn2_b": 0.1 * jax.random.normal(ks[5], (planes,), jnp.float32),
        }
        if project:
            p["sc_w"] = 0.1 * jax.random.normal(ks[6], (planes, cin, 1, 1), jnp.float32)
            p["sc_bn_g"] = 1.0 + 0.1 * jax.random.normal(ks[7], (planes,), jnp.float32)
            p["sc_bn_b"] = 0.1 * jax.random.normal(ks[8], (planes,), jnp.float32)
        return p

    # Config 1: projection shortcut — BasicBlock(4, 8, stride=2), x: (2,4,16,16).
    params1 = make_params(4, 8, True, jax.random.fold_in(key, 1))
    x1 = jax.random.normal(jax.random.fold_in(key, 2), (2, 4, 16, 16), jnp.float32)
    out1 = jax.block_until_ready(basic_block_forward(x1, params1, stride=2))
    ref1 = jax.block_until_ready(_ref_forward(x1, params1, 2, round_mxu_inputs=True))
    assert out1.shape == (2, 8, 8, 8), out1.shape
    np.testing.assert_allclose(np.asarray(out1), np.asarray(ref1),
                               rtol=2e-3, atol=2e-3)

    # Config 2: identity shortcut — BasicBlock(8, 8, stride=1), x: (2,8,16,16).
    params2 = make_params(8, 8, False, jax.random.fold_in(key, 3))
    x2 = jax.random.normal(jax.random.fold_in(key, 4), (2, 8, 16, 16), jnp.float32)
    out2 = jax.block_until_ready(basic_block_forward(x2, params2, stride=1))
    ref2 = jax.block_until_ready(_ref_forward(x2, params2, 1, round_mxu_inputs=True))
    assert out2.shape == (2, 8, 16, 16), out2.shape
    np.testing.assert_allclose(np.asarray(out2), np.asarray(ref2),
                               rtol=2e-3, atol=2e-3)

    print("KERNEL_OK")
</pallas_src>

<mosaic_0001>
module attributes {stable_mosaic.version = 11 : i64} {
  func.func @_conv_stats_kernel(%arg0: i32, %arg1: memref<128x48xbf16, #tpu.memory_space<vmem>>, %arg2: memref<48x128xbf16, #tpu.memory_space<vmem>>, %arg3: memref<128x16xbf16, #tpu.memory_space<vmem>>, %arg4: memref<16x128xbf16, #tpu.memory_space<vmem>>, %arg5: memref<128x128xf32, #tpu.memory_space<vmem>>, %arg6: memref<1x2x128xf32, #tpu.memory_space<vmem>>, %arg7: memref<1x2x128xf32, #tpu.memory_space<vmem>>) attributes {dimension_semantics = [#tpu.dimension_semantics<parallel>], iteration_bounds = array<i64: 1>, scalar_prefetch = 0 : i64, scratch_operands = 0 : i64, tpu.core_type = #tpu.core_type<tc>, window_params = [{transform_indices = @transform_0, window_bounds = array<i64: 128, 48>}, {pipeline_mode = #tpu.pipeline_mode<synchronous>, transform_indices = @transform_1, window_bounds = array<i64: 48, 128>}, {transform_indices = @transform_2, window_bounds = array<i64: 128, 16>}, {pipeline_mode = #tpu.pipeline_mode<synchronous>, transform_indices = @transform_3, window_bounds = array<i64: 16, 128>}, {transform_indices = @transform_4, window_bounds = array<i64: 128, 128>}, {transform_indices = @transform_5, window_bounds = array<i64: 1, 2, 128>}, {transform_indices = @transform_6, window_bounds = array<i64: 1, 2, 128>}]} {
    %c0 = arith.constant 0 : index
    %c0_0 = arith.constant 0 : index
    %0 = vector.load %arg1[%c0, %c0_0] : memref<128x48xbf16, #tpu.memory_space<vmem>>, vector<128x48xbf16>
    %c0_1 = arith.constant 0 : index
    %c0_2 = arith.constant 0 : index
    %1 = vector.load %arg2[%c0_1, %c0_2] : memref<48x128xbf16, #tpu.memory_space<vmem>>, vector<48x128xbf16>
    %cst = arith.constant dense<0.000000e+00> : vector<128x128xf32>
    %2 = tpu.matmul %0, %1, %cst {dimension_numbers = #tpu.dot_dimension_numbers<[1], [0], [0], [1], [0, 0, 1, 1], [], []>} : vector<128x48xbf16>, vector<48x128xbf16>, vector<128x128xf32> -> vector<128x128xf32>
    %c0_3 = arith.constant 0 : index
    %c0_4 = arith.constant 0 : index
    %3 = vector.load %arg5[%c0_3, %c0_4] : memref<128x128xf32, #tpu.memory_space<vmem>>, vector<128x128xf32>
    tpu.vector_store %arg5[%c0_3, %c0_4], %2 {strides = array<i32>} : memref<128x128xf32, #tpu.memory_space<vmem>>, vector<128x128xf32>,
    %cst_5 = arith.constant dense<0.000000e+00> : vector<128xf32>
    %4 = vector.multi_reduction <add>, %2, %cst_5 [0] : vector<128x128xf32> to vector<128xf32>
    %5 = vector.shape_cast %4 : vector<128xf32> to vector<1x128xf32>
    %6 = arith.mulf %2, %2 : vector<128x128xf32>
    %cst_6 = arith.constant dense<0.000000e+00> : vector<128xf32>
    %7 = vector.multi_reduction <add>, %6, %cst_6 [0] : vector<128x128xf32> to vector<128xf32>
    %8 = vector.shape_cast %7 : vector<128xf32> to vector<1x128xf32>
    %9 = tpu.concatenate %5, %8 in 0 : vector<1x128xf32>, vector<1x128xf32> -> vector<2x128xf32>
    %c0_7 = arith.constant 0 : index
    %c0_8 = arith.constant 0 : index
    %c0_9 = arith.constant 0 : index
    %10 = vector.load %arg6[%c0_7, %c0_8, %c0_9] : memref<1x2x128xf32, #tpu.memory_space<vmem>>, vector<1x2x128xf32>
    %11 = vector.shape_cast %10 : vector<1x2x128xf32> to vector<2x128xf32>
    %12 = vector.shape_cast %9 : vector<2x128xf32> to vector<1x2x128xf32>
    tpu.vector_store %arg6[%c0_7, %c0_8, %c0_9], %12 {strides = array<i32>} : memref<1x2x128xf32, #tpu.memory_space<vmem>>, vector<1x2x128xf32>,
    %c0_10 = arith.constant 0 : index
    %c0_11 = arith.constant 0 : index
    %13 = vector.load %arg3[%c0_10, %c0_11] : memref<128x16xbf16, #tpu.memory_space<vmem>>, vector<128x16xbf16>
    %c0_12 = arith.constant 0 : index
    %c0_13 = arith.constant 0 : index
    %14 = vector.load %arg4[%c0_12, %c0_13] : memref<16x128xbf16, #tpu.memory_space<vmem>>, vector<16x128xbf16>
    %cst_14 = arith.constant dense<0.000000e+00> : vector<128x128xf32>
    %15 = tpu.matmul %13, %14, %cst_14 {dimension_numbers = #tpu.dot_dimension_numbers<[1], [0], [0], [1], [0, 0, 1, 1], [], []>} : vector<128x16xbf16>, vector<16x128xbf16>, vector<128x128xf32> -> vector<128x128xf32>
    %cst_15 = arith.constant dense<0.000000e+00> : vector<128xf32>
    %16 = vector.multi_reduction <add>, %15, %cst_15 [0] : vector<128x128xf32> to vector<128xf32>
    %17 = vector.shape_cast %16 : vector<128xf32> to vector<1x128xf32>
    %18 = arith.mulf %15, %15 : vector<128x128xf32>
    %cst_16 = arith.constant dense<0.000000e+00> : vector<128xf32>
    %19 = vector.multi_reduction <add>, %18, %cst_16 [0] : vector<128x128xf32> to vector<128xf32>
    %20 = vector.shape_cast %19 : vector<128xf32> to vector<1x128xf32>
    %21 = tpu.concatenate %17, %20 in 0 : vector<1x128xf32>, vector<1x128xf32> -> vector<2x128xf32>
    %c0_17 = arith.constant 0 : index
    %c0_18 = arith.constant 0 : index
    %c0_19 = arith.constant 0 : index
    %22 = vector.load %arg7[%c0_17, %c0_18, %c0_19] : memref<1x2x128xf32, #tpu.memory_space<vmem>>, vector<1x2x128xf32>
    %23 = vector.shape_cast %22 : vector<1x2x128xf32> to vector<2x128xf32>
    %24 = vector.shape_cast %21 : vector<2x128xf32> to vector<1x2x128xf32>
    tpu.vector_store %arg7[%c0_17, %c0_18, %c0_19], %24 {strides = array<i32>} : memref<1x2x128xf32, #tpu.memory_space<vmem>>, vector<1x2x128xf32>,
    return
  }
  func.func @transform_0(%arg0: i32) -> (i32, i32) {
    %c0_i32 = arith.constant 0 : i32
    %c0_i32_0 = arith.constant 0 : i32
    return %arg0, %c0_i32 : i32, i32
  }
  func.func @transform_1(%arg0: i32) -> (i32, i32) {
    %c0_i32 = arith.constant 0 : i32
    %c0_i32_0 = arith.constant 0 : i32
    %c0_i32_1 = arith.constant 0 : i32
    return %c0_i32, %c0_i32_0 : i32, i32
  }
  func.func @transform_2(%arg0: i32) -> (i32, i32) {
    %c0_i32 = arith.constant 0 : i32
    %c0_i32_0 = arith.constant 0 : i32
    return %arg0, %c0_i32 : i32, i32
  }
  func.func @transform_3(%arg0: i32) -> (i32, i32) {
    %c0_i32 = arith.constant 0 : i32
    %c0_i32_0 = arith.constant 0 : i32
    %c0_i32_1 = arith.constant 0 : i32
    return %c0_i32, %c0_i32_0 : i32, i32
  }
  func.func @transform_4(%arg0: i32) -> (i32, i32) {
    %c0_i32 = arith.constant 0 : i32
    %c0_i32_0 = arith.constant 0 : i32
    return %arg0, %c0_i32 : i32, i32
  }
  func.func @transform_5(%arg0: i32) -> (i32, i32, i32) {
    %c0_i32 = arith.constant 0 : i32
    %c0_i32_0 = arith.constant 0 : i32
    %c0_i32_1 = arith.constant 0 : i32
    return %arg0, %c0_i32, %c0_i32_0 : i32, i32, i32
  }
  func.func @transform_6(%arg0: i32) -> (i32, i32, i32) {
    %c0_i32 = arith.constant 0 : i32
    %c0_i32_0 = arith.constant 0 : i32
    %c0_i32_1 = arith.constant 0 : i32
    return %arg0, %c0_i32, %c0_i32_0 : i32, i32, i32
  }
}

</mosaic_0001>

<bundles_post_ra>
// kernel: tpu_custom_call.1
= control target key start
LH: loop header
LB: loop body
LE: loop exit
PB: predicated region body
PF: predicated region fallthrough
CT: control target
= control target key end

     0   :  { %12 = vsyncpa [#allocation3], 0  ;;  %vm318_vm0 = vcmask 130048   ;;  %s888_s0 = inlined_call_operand.vmem [shape: bf16[128,48], index: 0, kind: input, shape index: {}]   ;;  %s889_s1 = inlined_call_operand.vmem [shape: bf16[48,128], index: 1, kind: input, shape index: {}]   ;;  %s890_s2 = inlined_call_operand.vmem [shape: bf16[128,16], index: 2, kind: input, shape index: {}]   ;;  %s891_s3 = inlined_call_operand.vmem [shape: bf16[16,128], index: 3, kind: input, shape index: {}]   ;;  %s892_s4 = inlined_call_operand.hbm [shape: f32[128,128], index: 4, kind: output, shape index: {0}]   ;;  %s893_s5 = inlined_call_operand.hbm [shape: f32[1,2,128], index: 5, kind: output, shape index: {1}]   ;;  %s894_s6 = inlined_call_operand.hbm [shape: f32[1,2,128], index: 6, kind: output, shape index: {2}]  }
   0x1   :  { %v607_v0 = vld [vmem:[%s889_s1 + $0x10] sm:$0xff]  ;;  %v616_v1 = vld [vmem:[%s891_s3] sm:$0xff]  ;;  %v606_v3 = vld [vmem:[%s889_s1 + $0x8] sm:$0xff] }
   0x2   :  { %v608_v2 = vld [vmem:[%s890_s2] sm:$0xff]  ;;  %133 = vmatpush.bf16.msra.mxu0 %v607_v0  ;;  %350 = vmatpush.bf16.msra.mxu1 %v616_v1  ;;  %v613_v4 = vld [vmem:[%s890_s2 + $0x28] sm:$0xff] }
   0x3   :  { %617 = vmatpush.bf16.msra.mxu2 %v607_v0  ;;  %620 = vmatpush.bf16.msra.mxu3 %v616_v1 }
   0x4   :  { %13 = vsyncpa [#allocation5], 0  ;;  %v605_v5 = vld [vmem:[%s889_s1] sm:$0xff]  ;;  %vm103_vm1 = vcmask 392192   ;;  %v609_v8 = vld [vmem:[%s890_s2 + $0x8] sm:$0xff]  ;;  %s458_s12 = sshll.u32 %s892_s4, 4  ;;  %s459_s12 = int_to_ptr.hbm [resolvable:$true] %s458_s12 }
   0x5   :  { %589 = vmatmul.msk.bf16.vlgmr.msra.gmra.mxu1 %vm318_vm0, %v608_v2  ;;  %v597_v6 = vld [vmem:[%s888_s0] sm:$0xff]  ;;  %v614_v9 = vld [vmem:[%s890_s2 + $0x30] sm:$0xff]  ;;  %v598_v10 = vld [vmem:[%s888_s0 + $0x8] sm:$0xff]  ;;  %s703_s4 = smov 128   ;;  %s704_s1 = smov 8   ;;  %vm251_vm2 = vcmask 1040384  }
   0x6   :  { %134 = vmatpush.bf16.msra.mxu0 %v606_v3  ;;  %594 = vmatmul.msk.bf16.vlgmr.msra.gmra.mxu3 %vm318_vm0, %v613_v4  ;;  %v601_v7 = vld [vmem:[%s888_s0 + $0x20] sm:$0xff]  ;;  %v602_v11 = vld [vmem:[%s888_s0 + $0x28] sm:$0xff]  ;;  %v610_v12 = vld [vmem:[%s890_s2 + $0x10] sm:$0xff]  ;;  %s705_s13 = smov [#allocation4]   ;;  %s472_s17 = sshll.u32 %s893_s5, 4  ;;  %s473_s17 = int_to_ptr.hbm [resolvable:$true] %s472_s17 }
   0x7   :  { %618 = vmatpush.bf16.msra.mxu2 %v606_v3  ;;  %v615_v13 = vld [vmem:[%s890_s2 + $0x38] sm:$0xff]  ;;  %v599_v14 = vld [vmem:[%s888_s0 + $0x10] sm:$0xff]  ;;  %v612_v19 = vld [vmem:[%s890_s2 + $0x20] sm:$0xff]  ;;  %s470_s14 = sshll.u32 %s705_s13, 4  ;;  %s706_s18 = smov [#allocation6]   ;;  %s471_s14 = int_to_ptr.vmem [resolvable:$true] %s470_s14 }
   0x8   :  { %v603_v15 = vld [vmem:[%s888_s0 + $0x30] sm:$0xff]  ;;  %v611_v16 = vld [vmem:[%s890_s2 + $0x18] sm:$0xff]  ;;  %s481_s19 = sshll.u32 %s706_s18, 4  ;;  %s483_s22 = sshll.u32 %s894_s6, 4  ;;  %s482_s19 = int_to_ptr.vmem [resolvable:$true] %s481_s19  ;;  %s484_s22 = int_to_ptr.hbm [resolvable:$true] %s483_s22 }
   0x9   :  { %v600_v17 = vld [vmem:[%s888_s0 + $0x18] sm:$0xff] }
   0xa   :  { %135 = vmatpush.bf16.msra.mxu0 %v605_v5  ;;  %v604_v18 = vld [vmem:[%s888_s0 + $0x38] sm:$0xff]  ;;  %s702_s0 = smov [#allocation2]  }
   0xb   :  { %619 = vmatpush.bf16.msra.mxu2 %v605_v5  ;;  %s844_s2 = sshll.u32 %s702_s0, 4  ;;  %s457_s2 = int_to_ptr.vmem [resolvable:$true] %s844_s2 }
   0xd   :  { %545 = vmatmul.msk.bf16.vlgmr.msra.gmra.mxu0 %vm103_vm1, %v597_v6 }
   0xe   :  { %549 = vmatmul.msk.bf16.vlgmr.msra.gmra.mxu2 %vm103_vm1, %v601_v7 }
  0x15   :  { %590 = vmatmul.msk.bf16.gmra.mxu1 %vm318_vm0, %v609_v8 }
  0x16   :  { %595 = vmatmul.msk.bf16.gmra.mxu3 %vm318_vm0, %v614_v9 }
  0x1d   :  { %546 = vmatmul.msk.bf16.gmra.mxu0 %vm103_vm1, %v598_v10 }
  0x1e   :  { %550 = vmatmul.msk.bf16.gmra.mxu2 %vm103_vm1, %v602_v11 }
  0x25   :  { %591 = vmatmul.msk.bf16.gmra.mxu1 %vm318_vm0, %v610_v12 }
  0x26   :  { %596 = vmatmul.msk.bf16.gmra.mxu3 %vm318_vm0, %v615_v13 }
  0x2d   :  { %547 = vmatmul.msk.bf16.gmra.mxu0 %vm103_vm1, %v599_v14 }
  0x2e   :  { %551 = vmatmul.msk.bf16.gmra.mxu2 %vm103_vm1, %v603_v15 }
  0x35   :  { %592 = vmatmul.msk.bf16.gmra.mxu1 %vm318_vm0, %v611_v16 }
  0x3d   :  { %548 = vmatmul.msk.bf16.gmra.mxu0 %vm103_vm1, %v600_v17 }
  0x3e   :  { %552 = vmatmul.msk.bf16.gmra.mxu2 %vm103_vm1, %v604_v18 }
  0x45   :  { %593 = vmatmul.msk.bf16.gmra.mxu1 %vm318_vm0, %v612_v19 }
  0x82   :  { %v352_v20 = vpop.f32.mrf.mxu1 }
  0x83   :  { %v413_v50 = vmul.f32 %v352_v20, %v352_v20 }
  0x89   :  { %v826_v30 = vpop.f32.mrf.mxu3 }
  0x8a   :  { %v137_v21 = vpop.f32.mrf.mxu0  ;;  %v354_v22 = vpop.f32.mrf.mxu1 }
  0x8b   :  { %177 = vst [vmem:[#allocation2] sm:$0xff] %v137_v21  ;;  %v214_v42 = vmul.f32 %v137_v21, %v137_v21  ;;  %v414_v45 = vmul.f32 %v354_v22, %v354_v22  ;;  %v392_v54 = vadd.f32 %v354_v22, %v352_v20 }
  0x8d   :  { %v429_v58 = vadd.f32 %v414_v45, %v413_v50 }
  0x91   :  { %v818_v23 = vpop.f32.mrf.mxu2  ;;  %v832_v36 = vpop.f32.mrf.mxu3 }
  0x92   :  { %v139_v24 = vpop.f32.mrf.mxu0  ;;  %v357_v25 = vpop.f32.mrf.mxu1  ;;  %185 = vst [vmem:[#allocation2 + $0x40] sm:$0xff] %v818_v23 }
  0x93   :  { %178 = vst [vmem:[#allocation2 + $0x8] sm:$0xff] %v139_v24  ;;  %v215_v40 = vmul.f32 %v139_v24, %v139_v24  ;;  %v193_v43 = vadd.f32 %v139_v24, %v137_v21  ;;  %v415_v51 = vmul.f32 %v357_v25, %v357_v25  ;;  %v393_v60 = vadd.f32 %v392_v54, %v357_v25 }
  0x94   :  { %v222_v24 = vmul.f32 %v818_v23, %v818_v23 }
  0x95   :  { %v230_v46 = vadd.f32 %v215_v40, %v214_v42  ;;  %v430_v0 = vadd.f32 %v429_v58, %v415_v51 }
  0x99   :  { %v821_v26 = vpop.f32.mrf.mxu2  ;;  %v837_v41 = vpop.f32.mrf.mxu3 }
  0x9a   :  { %v142_v27 = vpop.f32.mrf.mxu0  ;;  %v359_v28 = vpop.f32.mrf.mxu1  ;;  %186 = vst [vmem:[#allocation2 + $0x48] sm:$0xff] %v821_v26 }
  0x9b   :  { %179 = vst [vmem:[#allocation2 + $0x10] sm:$0xff] %v142_v27  ;;  %v216_v44 = vmul.f32 %v142_v27, %v142_v27  ;;  %v194_v47 = vadd.f32 %v193_v43, %v142_v27  ;;  %v416_v59 = vmul.f32 %v359_v28, %v359_v28  ;;  %v394_v2 = vadd.f32 %v393_v60, %v359_v28 }
  0x9d   :  { %v231_v55 = vadd.f32 %v230_v46, %v216_v44  ;;  %v431_v7 = vadd.f32 %v430_v0, %v416_v59  ;;  %v425_v0 = vmul.f32 %v837_v41, %v837_v41 }
  0xa1   :  { %v824_v29 = vpop.f32.mrf.mxu2  ;;  %v842_v6 = vpop.f32.mrf.mxu3 }
  0xa2   :  { %v144_v31 = vpop.f32.mrf.mxu0  ;;  %v362_v32 = vpop.f32.mrf.mxu1  ;;  %187 = vst [vmem:[#allocation2 + $0x50] sm:$0xff] %v824_v29  ;;  %v224_v43 = vmul.f32 %v824_v29, %v824_v29 }
  0xa3   :  { %180 = vst [vmem:[#allocation2 + $0x18] sm:$0xff] %v144_v31  ;;  %v217_v48 = vmul.f32 %v144_v31, %v144_v31  ;;  %v195_v56 = vadd.f32 %v194_v47, %v144_v31  ;;  %v417_v1 = vmul.f32 %v362_v32, %v362_v32  ;;  %v395_v9 = vadd.f32 %v394_v2, %v362_v32 }
  0xa5   :  { %v232_v61 = vadd.f32 %v231_v55, %v217_v48  ;;  %v432_v13 = vadd.f32 %v431_v7, %v417_v1 }
  0xa9   :  { %v829_v33 = vpop.f32.mrf.mxu2  ;;  %v387_v45 = vpop.f32.mrf.mxu3 }
  0xaa   :  { %v147_v34 = vpop.f32.mrf.mxu0  ;;  %v364_v35 = vpop.f32.mrf.mxu1  ;;  %188 = vst [vmem:[#allocation2 + $0x58] sm:$0xff] %v829_v33  ;;  %v225_v47 = vmul.f32 %v829_v33, %v829_v33 }
  0xab   :  { %181 = vst [vmem:[#allocation2 + $0x20] sm:$0xff] %v147_v34  ;;  %v218_v57 = vmul.f32 %v147_v34, %v147_v34  ;;  %v196_v62 = vadd.f32 %v195_v56, %v147_v34  ;;  %v418_v8 = vmul.f32 %v364_v35, %v364_v35  ;;  %v396_v17 = vadd.f32 %v395_v9, %v364_v35 }
  0xac   :  { %v223_v34 = vmul.f32 %v821_v26, %v821_v26 }
  0xad   :  { %v233_v3 = vadd.f32 %v232_v61, %v218_v57  ;;  %v433_v21 = vadd.f32 %v432_v13, %v418_v8 }
  0xb1   :  { %v834_v37 = vpop.f32.mrf.mxu2 }
  0xb2   :  { %v149_v38 = vpop.f32.mrf.mxu0  ;;  %v367_v39 = vpop.f32.mrf.mxu1  ;;  %189 = vst [vmem:[#allocation2 + $0x60] sm:$0xff] %v834_v37  ;;  %v226_v54 = vmul.f32 %v834_v37, %v834_v37 }
  0xb3   :  { %182 = vst [vmem:[#allocation2 + $0x28] sm:$0xff] %v149_v38  ;;  %v219_v63 = vmul.f32 %v149_v38, %v149_v38  ;;  %v197_v4 = vadd.f32 %v196_v62, %v149_v38  ;;  %v419_v14 = vmul.f32 %v367_v39, %v367_v39  ;;  %v397_v25 = vadd.f32 %v396_v17, %v367_v39 }
  0xb5   :  { %v234_v10 = vadd.f32 %v233_v3, %v219_v63  ;;  %v434_v31 = vadd.f32 %v433_v21, %v419_v14 }
  0xb9   :  { %v839_v49 = vpop.f32.mrf.mxu2 }
  0xba   :  { %v152_v52 = vpop.f32.mrf.mxu0  ;;  %v369_v53 = vpop.f32.mrf.mxu1  ;;  %190 = vst [vmem:[#allocation2 + $0x68] sm:$0xff] %v839_v49  ;;  %v227_v59 = vmul.f32 %v839_v49, %v839_v49 }
  0xbb   :  { %183 = vst [vmem:[#allocation2 + $0x30] sm:$0xff] %v152_v52  ;;  %v220_v5 = vmul.f32 %v152_v52, %v152_v52  ;;  %v198_v11 = vadd.f32 %v197_v4, %v152_v52  ;;  %v420_v22 = vmul.f32 %v369_v53, %v369_v53  ;;  %v398_v35 = vadd.f32 %v397_v25, %v369_v53 }
  0xbc   :  { %v426_v4 = vmul.f32 %v842_v6, %v842_v6 }
  0xbd   :  { %v235_v18 = vadd.f32 %v234_v10, %v220_v5  ;;  %v435_v42 = vadd.f32 %v434_v31, %v420_v22  ;;  %v427_v10 = vmul.f32 %v387_v45, %v387_v45 }
  0xc1   :  { %v172_v12 = vpop.f32.mrf.mxu2 }
  0xc2   :  { %v154_v15 = vpop.f32.mrf.mxu0  ;;  %v372_v16 = vpop.f32.mrf.mxu1  ;;  %191 = vst [vmem:[#allocation2 + $0x70] sm:$0xff] %v172_v12 }
  0xc3   :  { %184 = vst [vmem:[#allocation2 + $0x38] sm:$0xff] %v154_v15  ;;  %v199_v19 = vadd.f32 %v198_v11, %v154_v15  ;;  %v221_v20 = vmul.f32 %v154_v15, %v154_v15  ;;  %v421_v32 = vmul.f32 %v372_v16, %v372_v16 }
  0xc5   :  { %v200_v27 = vadd.f32 %v199_v19, %v818_v23  ;;  %v236_v28 = vadd.f32 %v235_v18, %v221_v20  ;;  %v399_v23 = vadd.f32 %v398_v35, %v372_v16  ;;  %v436_v48 = vadd.f32 %v435_v42, %v421_v32 }
  0xc7   :  { %v201_v38 = vadd.f32 %v200_v27, %v821_v26  ;;  %v237_v40 = vadd.f32 %v236_v28, %v222_v24 }
  0xc9   :  { %v202_v39 = vadd.f32 %v201_v38, %v824_v29  ;;  %v238_v44 = vadd.f32 %v237_v40, %v223_v34  ;;  %v174_v46 = vpop.f32.mrf.mxu2  ;;  %v423_v29 = vmul.f32 %v826_v30, %v826_v30 }
  0xca   :  { %v374_v50 = vpop.f32.mrf.mxu1  ;;  %192 = vst [vmem:[#allocation2 + $0x78] sm:$0xff] %v174_v46  ;;  %v229_v5 = vmul.f32 %v174_v46, %v174_v46 }
  0xcb   :  { %v239_v26 = vadd.f32 %v238_v44, %v224_v43  ;;  %v203_v51 = vadd.f32 %v202_v39, %v829_v33  ;;  %v400_v52 = vadd.f32 %v399_v23, %v374_v50  ;;  %v422_v53 = vmul.f32 %v374_v50, %v374_v50  ;;  %464 = dma.vmem_to_hbm [thread:$0]  %s457_s2, 2048, %s459_s12, [#allocation3], %s703_s4, %s703_s4, %s704_s1  }
  0xcc   :  { %v424_v33 = vmul.f32 %v832_v36, %v832_v36 }
  0xcd   :  { %v204_v55 = vadd.f32 %v203_v51, %v834_v37  ;;  %v240_v56 = vadd.f32 %v239_v26, %v225_v47  ;;  %v401_v57 = vadd.f32 %v400_v52, %v826_v30  ;;  %v437_v58 = vadd.f32 %v436_v48, %v422_v53 }
  0xce   :  { %v228_v37 = vmul.f32 %v172_v12, %v172_v12 }
  0xcf   :  { %v205_v60 = vadd.f32 %v204_v55, %v839_v49  ;;  %v241_v61 = vadd.f32 %v240_v56, %v226_v54  ;;  %v402_v62 = vadd.f32 %v401_v57, %v832_v36  ;;  %v438_v63 = vadd.f32 %v437_v58, %v423_v29  ;;  %v389_v49 = vpop.f32.mrf.mxu3 }
  0xd1   :  { %v206_v1 = vadd.f32 %v205_v60, %v172_v12  ;;  %v242_v2 = vadd.f32 %v241_v61, %v227_v59  ;;  %v439_v30 = vadd.f32 %v438_v63, %v424_v33  ;;  %v403_v3 = vadd.f32 %v402_v62, %v837_v41 }
  0xd2   :  { %v428_v12 = vmul.f32 %v389_v49, %v389_v49 }
  0xd3   :  { %v243_v7 = vadd.f32 %v242_v2, %v228_v37  ;;  %v207_v8 = vadd.f32 %v206_v1, %v174_v46  ;;  %v404_v9 = vadd.f32 %v403_v3, %v842_v6  ;;  %v440_v36 = vadd.f32 %v439_v30, %v425_v0 }
  0xd5   :  { %v208_v11 = vrot.slane %v207_v8, 4  ;;  %v244_v13 = vadd.f32 %v243_v7, %v229_v5  ;;  %v405_v14 = vadd.f32 %v404_v9, %v387_v45  ;;  %v441_v15 = vadd.f32 %v440_v36, %v426_v4 }
  0xd7   :  { %v209_v16 = vadd.f32 %v208_v11, %v207_v8  ;;  %v245_v17 = vrot.slane %v244_v13, 4  ;;  %v406_v18 = vadd.f32 %v405_v14, %v389_v49  ;;  %v442_v41 = vadd.f32 %v441_v15, %v427_v10 }
  0xd9   :  { %v210_v19 = vrot.slane %v209_v16, 2  ;;  %v246_v20 = vadd.f32 %v245_v17, %v244_v13  ;;  %v407_v21 = vrot.slane %v406_v18, 4  ;;  %v443_v22 = vadd.f32 %v442_v41, %v428_v12 }
  0xdb   :  { %v211_v24 = vadd.f32 %v210_v19, %v209_v16  ;;  %v247_v25 = vrot.slane %v246_v20, 2  ;;  %v408_v27 = vadd.f32 %v407_v21, %v406_v18  ;;  %v444_v28 = vrot.slane %v443_v22, 4 }
  0xdd   :  { %v212_v6 = vrot.slane %v211_v24, 1  ;;  %v248_v31 = vadd.f32 %v247_v25, %v246_v20  ;;  %v409_v32 = vrot.slane %v408_v27, 2  ;;  %v445_v34 = vadd.f32 %v444_v28, %v443_v22 }
  0xdf   :  { %v249_v35 = vrot.slane %v248_v31, 1  ;;  %v410_v38 = vadd.f32 %v409_v32, %v408_v27  ;;  %v446_v40 = vrot.slane %v445_v34, 2  ;;  %v213_v42 = vadd.f32 %v212_v6, %v211_v24 }
  0xe1   :  { %v411_v43 = vrot.slane %v410_v38, 1  ;;  %v447_v39 = vadd.f32 %v446_v40, %v445_v34  ;;  %v250_v44 = vadd.f32 %v249_v35, %v248_v31 }
  0xe3   :  { %v448_v23 = vrot.slane %v447_v39, 1  ;;  %v252_v45 = vsel %vm251_vm2, %v213_v42, %v250_v44  ;;  %v412_v46 = vadd.f32 %v411_v43, %v410_v38 }
  0xe4   :  { %253 = vst [vmem:[#allocation4] sm:$0x3] %v252_v45 }
  0xe5   :  { %475 = dma.vmem_to_hbm [thread:$0]  %s471_s14, 32, %s473_s17, [#allocation5]   ;;  %v449_v47 = vadd.f32 %v448_v23, %v447_v39 }
  0xe7   :  { %v450_v48 = vsel %vm251_vm2, %v412_v46, %v449_v47 }
  0xe8   :  { %451 = vst [vmem:[#allocation6] sm:$0x3] %v450_v48 }
  0xe9   :  { %486 = dma.vmem_to_hbm [thread:$0]  %s482_s19, 32, %s484_s22, [#allocation5]  }
  0xea   :  { %698 = dma.done.wait [#allocation3], 2048  }
  0xeb   :  { %699 = vsyncadd [#allocation3], 4294965248 }
  0xec   :  { %700 = dma.done.wait [#allocation5], 64  }
  0xed   :  { %701 = vsyncadd [#allocation5], 4294967232 }
  0xee   :  { %499 = vsyncpa [#allocation3], 1 }
  0xef   :  { %500 = vsyncpa [#allocation5], 1 }

</bundles_post_ra>
